<compile_context>
chip_gen: v6e
topology: v6e:2x2x1
jax: 0.10.0
libtpu: 0.0.40
codegen_flags: <defaults>
</compile_context>

<pallas_src>
import functools

import jax
import jax.numpy as jnp
from jax.experimental import pallas as pl
from jax.experimental.pallas import tpu as pltpu

_LANE = 128
_NEG_BIG = -1e30  # padded-logit bias: exp(_NEG_BIG - m) == 0 for any finite m


def _round_up(n, m):
    return ((n + m - 1) // m) * m


def _cdiv(a, b):
    return -(-a // b)


def sacd_kernel(x_ref, w1_ref, b1_ref, w2_ref, b2_ref, out_ref):
    # x_ref : (TB, D)  bf16/f32    w1_ref: (D, H)  bf16    b1_ref: (1, H)  f32
    # w2_ref: (H, Cp)  bf16 (zero-padded cols)             b2_ref: (1, Cp) f32 (-1e30 pad)
    x = x_ref[...].astype(jnp.bfloat16)   # no-op when x is already bf16

    # ---- fc1 + relu (bf16 MXU matmul, f32 accumulate) ----
    h = jnp.dot(x, w1_ref[...], preferred_element_type=jnp.float32)
    h = jnp.maximum(h + b1_ref[...], 0.0)

    # ---- fc2 (lane-dense: Cp is a multiple of 128) ----
    logits = jnp.dot(h.astype(jnp.bfloat16), w2_ref[...],
                     preferred_element_type=jnp.float32)
    logits = logits + b2_ref[...]          # padded columns -> ~-1e30

    # ---- softmax over last axis (torch dim=1); padded columns contribute 0 ----
    m = jnp.max(logits, axis=-1, keepdims=True)
    e = jnp.exp(logits - m)
    denom = jnp.sum(e, axis=-1, keepdims=True)
    out_ref[...] = (e * pl.reciprocal(denom, approx=False)).astype(out_ref.dtype)


def prepare_params(w1, b1, w2, b2):
    """One-time parameter preprocessing (hoisted out of the per-call path).

    Casts weights to bf16 and lane-pads fc2 to a multiple of 128 columns
    (zero weights, -1e30 bias) so every output store is a full unmasked vst
    and the padded lanes vanish from the softmax.
    """
    H = w1.shape[1]
    C = w2.shape[1]
    Cp = _round_up(C, _LANE)
    w1b = jnp.asarray(w1, jnp.bfloat16)
    b1f = jnp.asarray(b1, jnp.float32).reshape(1, H)
    w2p = jnp.zeros((H, Cp), jnp.bfloat16).at[:, :C].set(
        jnp.asarray(w2, jnp.bfloat16))
    b2p = jnp.full((1, Cp), _NEG_BIG, jnp.float32).at[:, :C].set(
        jnp.asarray(b2, jnp.float32).reshape(1, C))
    return w1b, b1f, w2p, b2p


@functools.partial(jax.jit, static_argnames=("num_clients", "block_b"))
def sacd_forward(x, w1b, b1f, w2p, b2p, *, num_clients, block_b=512):
    """x: (B, D) bf16 (or f32) -> client_probs: (B, num_clients) f32.

    Params must already be preprocessed by prepare_params().  block_b is the
    batch-tile upper bound; 512 works well on v5e/v6e/v7x (sweep 512/1024 on
    v6e for very large B).
    """
    B, D = x.shape
    H = w1b.shape[1]
    Cp = w2p.shape[1]
    C = num_clients

    # Batch tile: multiple of 8 sublanes, capped at block_b and at roughly
    # half the batch so the "parallel" grid axis has >= 2 steps for v7x's two
    # TensorCores.  Ragged last tile (B % TB != 0) is handled by Pallas'
    # partial-block clipping -- no wrapper-side jnp.pad copy of x.
    half_b = _round_up(max(_cdiv(B, 2), 1), 8)
    TB = max(8, min(block_b, half_b))
    grid = (_cdiv(B, TB),)

    # Raise the scoped-VMEM limit only when the tiles actually need it.
    vmem_est = (2 * TB * D * x.dtype.itemsize          # double-buffered x tile
                + 2 * TB * Cp * 4                      # double-buffered out tile
                + 2 * (D * H * 2 + H * Cp * 2 + H * 4 + Cp * 4))  # params
    cp_kwargs = dict(dimension_semantics=("parallel",))
    if vmem_est > 30 * 1024 * 1024:
        cp_kwargs["vmem_limit_bytes"] = min(int(vmem_est * 1.25),
                                            60 * 1024 * 1024)

    out = pl.pallas_call(
        sacd_kernel,
        out_shape=jax.ShapeDtypeStruct((B, Cp), jnp.float32),
        grid=grid,
        in_specs=[
            pl.BlockSpec((TB, D), lambda i: (i, 0)),   # x: tiled over batch
            pl.BlockSpec((D, H), lambda i: (0, 0)),    # w1: resident
            pl.BlockSpec((1, H), lambda i: (0, 0)),    # b1: resident
            pl.BlockSpec((H, Cp), lambda i: (0, 0)),   # w2 (padded): resident
            pl.BlockSpec((1, Cp), lambda i: (0, 0)),   # b2 (padded): resident
        ],
        out_specs=pl.BlockSpec((TB, Cp), lambda i: (i, 0)),
        compiler_params=pltpu.CompilerParams(**cp_kwargs),
    )(x, w1b, b1f, w2p, b2p)

    # Strip only the lane padding of the class dim (batch is never padded).
    # TODO(synk): if the downstream consumer accepts the (B, Cp) lane-padded
    # layout (or bf16 probs), return `out` directly and drop this slice.
    return out[:, :C]


def init_params(key, input_dim, num_clients, hidden=128):
    """Deterministic init mimicking nn.Linear's uniform(-1/sqrt(fan_in), ...)."""
    k1, k2, k3, k4 = jax.random.split(key, 4)
    lim1 = 1.0 / jnp.sqrt(input_dim)
    lim2 = 1.0 / jnp.sqrt(hidden)
    w1 = jax.random.uniform(k1, (input_dim, hidden), jnp.float32, -lim1, lim1)
    b1 = jax.random.uniform(k2, (1, hidden), jnp.float32, -lim1, lim1)
    w2 = jax.random.uniform(k3, (hidden, num_clients), jnp.float32, -lim2, lim2)
    b2 = jax.random.uniform(k4, (1, num_clients), jnp.float32, -lim2, lim2)
    return w1, b1, w2, b2


if __name__ == "__main__":
    # Small shapes consistent with the module (Cora's real input_dim is 1433;
    # a small synthetic input_dim keeps this self-contained).
    batch = 8
    input_dim = 64
    num_clients = 20
    num_selected = 5  # unused in forward; kept for module parity

    key = jax.random.PRNGKey(0)
    kx, kp, kx2 = jax.random.split(key, 3)
    # "Upstream producer" emits bf16 activations (halves the dominant x DMA).
    x = jax.random.normal(kx, (batch, input_dim), jnp.float32).astype(jnp.bfloat16)
    w1, b1, w2, b2 = init_params(kp, input_dim, num_clients)
    params = prepare_params(w1, b1, w2, b2)      # one-time, outside per-call path

    probs = sacd_forward(x, *params, num_clients=num_clients)
    probs = jax.block_until_ready(probs)
    assert probs.shape == (batch, num_clients)

    # References.
    def ref_bf16(xq):  # matches kernel precision (bf16 matmul inputs, f32 accum)
        xb = xq.astype(jnp.bfloat16)
        h = jnp.maximum(
            jnp.dot(xb, w1.astype(jnp.bfloat16),
                    preferred_element_type=jnp.float32) + b1, 0.0)
        logits = jnp.dot(h.astype(jnp.bfloat16), w2.astype(jnp.bfloat16),
                         preferred_element_type=jnp.float32) + b2
        return jax.nn.softmax(logits, axis=1)

    def ref_f32(xq):   # exact torch-module semantics (coarser check)
        h = jnp.maximum(xq.astype(jnp.float32) @ w1 + b1, 0.0)
        return jax.nn.softmax(h @ w2 + b2, axis=1)

    assert bool(jnp.all(jnp.isfinite(probs)))
    assert jnp.allclose(probs, ref_bf16(x), atol=2e-3, rtol=2e-3)
    assert jnp.allclose(probs, ref_f32(x), atol=2e-2, rtol=2e-2)
    assert jnp.allclose(jnp.sum(probs, axis=1), 1.0, atol=1e-5)

    # Ragged-batch path (B % TB != 0): exercises the Pallas partial-block
    # handling that replaced the wrapper-side jnp.pad copy.
    batch2 = 20   # TB becomes 16 -> grid=2 with a 4-row partial last tile
    x2 = jax.random.normal(kx2, (batch2, input_dim),
                           jnp.float32).astype(jnp.bfloat16)
    probs2 = jax.block_until_ready(
        sacd_forward(x2, *params, num_clients=num_clients))
    assert probs2.shape == (batch2, num_clients)
    assert bool(jnp.all(jnp.isfinite(probs2)))
    assert jnp.allclose(probs2, ref_bf16(x2), atol=2e-3, rtol=2e-3)
    assert jnp.allclose(jnp.sum(probs2, axis=1), 1.0, atol=1e-5)

    print("KERNEL_OK")
</pallas_src>

<mosaic_0001>
module attributes {stable_mosaic.version = 11 : i64} {
  func.func @sacd_kernel(%arg0: i32, %arg1: memref<8x64xbf16, #tpu.memory_space<vmem>>, %arg2: memref<64x128xbf16, #tpu.memory_space<vmem>>, %arg3: memref<1x128xf32, #tpu.memory_space<vmem>>, %arg4: memref<128x128xbf16, #tpu.memory_space<vmem>>, %arg5: memref<1x128xf32, #tpu.memory_space<vmem>>, %arg6: memref<8x128xf32, #tpu.memory_space<vmem>>) attributes {dimension_semantics = [#tpu.dimension_semantics<parallel>], iteration_bounds = array<i64: 1>, scalar_prefetch = 0 : i64, scratch_operands = 0 : i64, tpu.core_type = #tpu.core_type<tc>, window_params = [{transform_indices = @transform_0, window_bounds = array<i64: 8, 64>}, {pipeline_mode = #tpu.pipeline_mode<synchronous>, transform_indices = @transform_1, window_bounds = array<i64: 64, 128>}, {pipeline_mode = #tpu.pipeline_mode<synchronous>, transform_indices = @transform_2, window_bounds = array<i64: 1, 128>}, {pipeline_mode = #tpu.pipeline_mode<synchronous>, transform_indices = @transform_3, window_bounds = array<i64: 128, 128>}, {pipeline_mode = #tpu.pipeline_mode<synchronous>, transform_indices = @transform_4, window_bounds = array<i64: 1, 128>}, {transform_indices = @transform_5, window_bounds = array<i64: 8, 128>}]} {
    %c0 = arith.constant 0 : index
    %c0_0 = arith.constant 0 : index
    %0 = vector.load %arg1[%c0, %c0_0] : memref<8x64xbf16, #tpu.memory_space<vmem>>, vector<8x64xbf16>
    %c0_1 = arith.constant 0 : index
    %c0_2 = arith.constant 0 : index
    %1 = vector.load %arg2[%c0_1, %c0_2] : memref<64x128xbf16, #tpu.memory_space<vmem>>, vector<64x128xbf16>
    %cst = arith.constant dense<0.000000e+00> : vector<8x128xf32>
    %2 = tpu.matmul %0, %1, %cst {dimension_numbers = #tpu.dot_dimension_numbers<[1], [0], [0], [1], [0, 0, 1, 1], [], []>} : vector<8x64xbf16>, vector<64x128xbf16>, vector<8x128xf32> -> vector<8x128xf32>
    %c0_3 = arith.constant 0 : index
    %c0_4 = arith.constant 0 : index
    %3 = vector.load %arg3[%c0_3, %c0_4] : memref<1x128xf32, #tpu.memory_space<vmem>>, vector<1x128xf32>
    %4 = vector.broadcast %3 : vector<1x128xf32> to vector<8x128xf32>
    %5 = arith.addf %2, %4 : vector<8x128xf32>
    %cst_5 = arith.constant 0.000000e+00 : f32
    %6 = vector.broadcast %cst_5 : f32 to vector<8x128xf32>
    %7 = arith.maximumf %5, %6 : vector<8x128xf32>
    %8 = arith.truncf %7 : vector<8x128xf32> to vector<8x128xbf16>
    %c0_6 = arith.constant 0 : index
    %c0_7 = arith.constant 0 : index
    %9 = vector.load %arg4[%c0_6, %c0_7] : memref<128x128xbf16, #tpu.memory_space<vmem>>, vector<128x128xbf16>
    %cst_8 = arith.constant dense<0.000000e+00> : vector<8x128xf32>
    %10 = tpu.matmul %8, %9, %cst_8 {dimension_numbers = #tpu.dot_dimension_numbers<[1], [0], [0], [1], [0, 0, 1, 1], [], []>} : vector<8x128xbf16>, vector<128x128xbf16>, vector<8x128xf32> -> vector<8x128xf32>
    %c0_9 = arith.constant 0 : index
    %c0_10 = arith.constant 0 : index
    %11 = vector.load %arg5[%c0_9, %c0_10] : memref<1x128xf32, #tpu.memory_space<vmem>>, vector<1x128xf32>
    %12 = vector.broadcast %11 : vector<1x128xf32> to vector<8x128xf32>
    %13 = arith.addf %10, %12 : vector<8x128xf32>
    %cst_11 = arith.constant dense<0xFF800000> : vector<8xf32>
    %14 = vector.multi_reduction <maximumf>, %13, %cst_11 [1] : vector<8x128xf32> to vector<8xf32>
    %15 = vector.shape_cast %14 : vector<8xf32> to vector<8x1xf32>
    %16 = vector.broadcast %15 : vector<8x1xf32> to vector<8x128xf32>
    %17 = arith.subf %13, %16 : vector<8x128xf32>
    %18 = math.exp %17 : vector<8x128xf32>
    %cst_12 = arith.constant dense<0.000000e+00> : vector<8xf32>
    %19 = vector.multi_reduction <add>, %18, %cst_12 [1] : vector<8x128xf32> to vector<8xf32>
    %20 = vector.shape_cast %19 : vector<8xf32> to vector<8x1xf32>
    %21 = tpu.reciprocal %20 : vector<8x1xf32> -> vector<8x1xf32>
    %22 = vector.broadcast %21 : vector<8x1xf32> to vector<8x128xf32>
    %23 = arith.mulf %18, %22 : vector<8x128xf32>
    %c0_13 = arith.constant 0 : index
    %c0_14 = arith.constant 0 : index
    %24 = vector.load %arg6[%c0_13, %c0_14] : memref<8x128xf32, #tpu.memory_space<vmem>>, vector<8x128xf32>
    tpu.vector_store %arg6[%c0_13, %c0_14], %23 {strides = array<i32>} : memref<8x128xf32, #tpu.memory_space<vmem>>, vector<8x128xf32>,
    return
  }
  func.func @transform_0(%arg0: i32) -> (i32, i32) {
    %c0_i32 = arith.constant 0 : i32
    %c0_i32_0 = arith.constant 0 : i32
    return %arg0, %c0_i32 : i32, i32
  }
  func.func @transform_1(%arg0: i32) -> (i32, i32) {
    %c0_i32 = arith.constant 0 : i32
    %c0_i32_0 = arith.constant 0 : i32
    %c0_i32_1 = arith.constant 0 : i32
    return %c0_i32, %c0_i32_0 : i32, i32
  }
  func.func @transform_2(%arg0: i32) -> (i32, i32) {
    %c0_i32 = arith.constant 0 : i32
    %c0_i32_0 = arith.constant 0 : i32
    %c0_i32_1 = arith.constant 0 : i32
    return %c0_i32, %c0_i32_0 : i32, i32
  }
  func.func @transform_3(%arg0: i32) -> (i32, i32) {
    %c0_i32 = arith.constant 0 : i32
    %c0_i32_0 = arith.constant 0 : i32
    %c0_i32_1 = arith.constant 0 : i32
    return %c0_i32, %c0_i32_0 : i32, i32
  }
  func.func @transform_4(%arg0: i32) -> (i32, i32) {
    %c0_i32 = arith.constant 0 : i32
    %c0_i32_0 = arith.constant 0 : i32
    %c0_i32_1 = arith.constant 0 : i32
    return %c0_i32, %c0_i32_0 : i32, i32
  }
  func.func @transform_5(%arg0: i32) -> (i32, i32) {
    %c0_i32 = arith.constant 0 : i32
    %c0_i32_0 = arith.constant 0 : i32
    return %arg0, %c0_i32 : i32, i32
  }
}

</mosaic_0001>

<bundles_post_ra>
// kernel: sacd_forward.1
= control target key start
LH: loop header
LB: loop body
LE: loop exit
PB: predicated region body
PF: predicated region fallthrough
CT: control target
= control target key end

     0   :  { %10 = vsyncpa [#allocation3], 0  ;;  %s511_s0 = inlined_call_operand.hbm [shape: bf16[8,64], index: 0, kind: input, shape index: {}]   ;;  %s512_s1 = inlined_call_operand.hbm [shape: bf16[64,128], index: 1, kind: input, shape index: {}]   ;;  %s513_s2 = inlined_call_operand.vmem [shape: f32[1,128], index: 2, kind: input, shape index: {}]   ;;  %s514_s3 = inlined_call_operand.hbm [shape: bf16[128,128], index: 3, kind: input, shape index: {}]   ;;  %s515_s4 = inlined_call_operand.vmem [shape: f32[1,128], index: 4, kind: input, shape index: {}]   ;;  %s516_s5 = inlined_call_operand.hbm [shape: f32[8,128], index: 5, kind: output, shape index: {}]  }
   0x1   :  { %11 = vsyncpa [#allocation6], 0 }
   0x2   :  { %12 = vsyncpa [#allocation4], 0  ;;  %s455_s18 = smov [#allocation5]  }
   0x3   :  { %s28_s19 = sshll.u32 %s455_s18, 4  ;;  %s29_s19 = int_to_ptr.vmem [resolvable:$true] %s28_s19 }
   0x4   :  { %s377_s20 = scalar_lea.vmem %s29_s19, 512  ;;  %p382_p1 = scmp.lt.s32.totalorder %s29_s19, %s29_s19 }
   0x5   :  { %p378_p0 = scmp.ne.s32.totalorder %s29_s19, %s377_s20  ;;  %p383_p2 = scmp.lt.s32.totalorder %s377_s20, %s377_s20 }
   0x7   :  { %p384_p3 = por %p383_p2, %p382_p1 }
   0x9   :  { %p385_p4 = pnand %p384_p3, %p378_p0 }
   0xb   :  { %388 = shalt.err (!%p385_p4)
}
   0xc   :  { %s456_s21 = smov 64   ;;  %s457_s22 = smov 4  }
   0xd   :  { %34 = dma.hbm_to_vmem [thread:$0]  %s512_s1, 512, %s29_s19, [#allocation6], %s456_s21, %s456_s21, %s457_s22  }
   0xe   :  { %s458_s25 = smov [#allocation2]   ;;  %s459_s27 = smov [#allocation7]  }
   0xf   :  { %s19_s26 = sshll.u32 %s458_s25, 4  ;;  %s42_s28 = sshll.u32 %s459_s27, 4  ;;  %s20_s26 = int_to_ptr.vmem [resolvable:$true] %s19_s26  ;;  %s43_s28 = int_to_ptr.vmem [resolvable:$true] %s42_s28 }
  0x10   :  { %s397_s29 = scalar_lea.vmem %s20_s26, 64  ;;  %p402_p6 = scmp.lt.s32.totalorder %s20_s26, %s20_s26 }
  0x11   :  { %p398_p5 = scmp.ne.s32.totalorder %s20_s26, %s397_s29  ;;  %p403_p7 = scmp.lt.s32.totalorder %s397_s29, %s397_s29 }
  0x13   :  { %p404_p8 = por %p403_p7, %p402_p6 }
  0x15   :  { %p405_p9 = pnand %p404_p8, %p398_p5 }
  0x17   :  { %408 = shalt.err (!%p405_p9)
}
  0x18   :  { %22 = dma.hbm_to_vmem [thread:$0]  %s511_s0, 64, %s20_s26, [#allocation3]  }
  0x19   :  { %s417_s7 = scalar_lea.vmem %s43_s28, 1024  ;;  %p422_p11 = scmp.lt.s32.totalorder %s43_s28, %s43_s28 }
  0x1a   :  { %p418_p10 = scmp.ne.s32.totalorder %s43_s28, %s417_s7  ;;  %p423_p12 = scmp.lt.s32.totalorder %s417_s7, %s417_s7 }
  0x1c   :  { %p424_p13 = por %p423_p12, %p422_p11 }
  0x1e   :  { %p425_p0 = pnand %p424_p13, %p418_p10 }
  0x20   :  { %428 = shalt.err (!%p425_p0)
}
  0x21   :  { %48 = dma.hbm_to_vmem [thread:$0]  %s514_s3, 1024, %s43_s28, [#allocation6], %s456_s21, %s456_s21, %s457_s22  }
  0x22   :  { %449 = dma.done.wait [#allocation3], 64  }
  0x23   :  { %450 = vsyncadd [#allocation3], 4294967232 }
  0x24   :  { %451 = dma.done.wait [#allocation6], 1536  }
  0x25   :  { %452 = vsyncadd [#allocation6], 4294965760  ;;  %v460_v0 = vmov 0.0   ;;  %vm461_vm0 = vmmov 0   ;;  %v353_v1 = vld [vmem:[#allocation5 + $0x18] sm:$0xff]   ;;  %v354_v2 = vld [vmem:[#allocation5 + $0x10] sm:$0xff]  }
  0x26   :  { %313 = vmatprep.subr.bf16.mxu0 %v460_v0  ;;  %321 = vmatprep.mubr.msk.bf16.mxu0 %vm461_vm0, %v460_v0  ;;  %v357_v3 = vld [vmem:[#allocation7 + $0x38] sm:$0xff]   ;;  %v355_v4 = vld [vmem:[#allocation5 + $0x8] sm:$0xff]   ;;  %v358_v5 = vld [vmem:[#allocation7 + $0x30] sm:$0xff]   ;;  %vm101_vm1 = vcmask 523264  }
  0x27   :  { %325 = vmatprep.subr.bf16.mxu1 %v460_v0  ;;  %341 = vmatprep.mubr.msk.bf16.mxu1 %vm461_vm0, %v460_v0  ;;  %v356_v6 = vld [vmem:[#allocation5] sm:$0xff]   ;;  %v359_v7 = vld [vmem:[#allocation7 + $0x28] sm:$0xff]   ;;  %v61_v8 = vld [vmem:[#allocation2] sm:$0xf] }
  0x28   :  { %314 = vmatpush3.bf16.msra.mxu0 %v353_v1  ;;  %326 = vmatpush3.bf16.msra.mxu1 %v357_v3  ;;  %v360_v9 = vld [vmem:[#allocation7 + $0x20] sm:$0xff]   ;;  %v361_v10 = vld [vmem:[#allocation7 + $0x18] sm:$0xff]   ;;  %v362_v11 = vld [vmem:[#allocation7 + $0x10] sm:$0xff]  }
  0x29   :  { %315 = vmatprep.subr.bf16.mxu0 %v460_v0  ;;  %327 = vmatprep.subr.bf16.mxu1 %v460_v0  ;;  %v363_v12 = vld [vmem:[#allocation7 + $0x8] sm:$0xff]   ;;  %v364_v13 = vld [vmem:[#allocation7] sm:$0xff]   ;;  %v284_v14 = vld [vmem:[%s513_s2] ss:$0 sm:$0xff]  ;;  %s462_s2 = smov [#allocation8]  }
  0x2a   :  { %v290_v22 = vld [vmem:[%s515_s4] ss:$0 sm:$0xff]  ;;  %s274_s11 = sshll.u32 %s462_s2, 4  ;;  %s275_s11 = int_to_ptr.vmem [resolvable:$true] %s274_s11 }
  0x2b   :  { %s429_s4 = scalar_lea.vmem %s275_s11, 128  ;;  %p434_p2 = scmp.lt.s32.totalorder %s275_s11, %s275_s11 }
  0x2c   :  { %316 = vmatpush3.bf16.msra.mxu0 %v354_v2  ;;  %328 = vmatpush3.bf16.msra.mxu1 %v358_v5  ;;  %p430_p1 = scmp.ne.s32.totalorder %s275_s11, %s429_s4  ;;  %p435_p3 = scmp.lt.s32.totalorder %s429_s4, %s429_s4 }
  0x2d   :  { %317 = vmatprep.subr.bf16.mxu0 %v460_v0  ;;  %329 = vmatprep.subr.bf16.mxu1 %v460_v0 }
  0x2e   :  { %p436_p4 = por %p435_p3, %p434_p2 }
  0x30   :  { %318 = vmatpush3.bf16.msra.mxu0 %v355_v4  ;;  %330 = vmatpush3.bf16.msra.mxu1 %v359_v7  ;;  %p437_p5 = pnand %p436_p4, %p430_p1 }
  0x31   :  { %319 = vmatprep.subr.bf16.mxu0 %v460_v0  ;;  %331 = vmatprep.subr.bf16.mxu1 %v460_v0 }
  0x34   :  { %320 = vmatpush3.bf16.msra.mxu0 %v356_v6  ;;  %332 = vmatpush3.bf16.msra.mxu1 %v360_v9 }
  0x35   :  { %333 = vmatprep.subr.bf16.mxu1 %v460_v0 }
  0x37   :  { %322 = vmatmul.mubr.msk.bf16.vlgmr.msra.gmra.mxu0 %vm101_vm1, %v61_v8 }
  0x38   :  { %334 = vmatpush3.bf16.msra.mxu1 %v361_v10 }
  0x39   :  { %335 = vmatprep.subr.bf16.mxu1 %v460_v0 }
  0x3c   :  { %336 = vmatpush3.bf16.msra.mxu1 %v362_v11 }
  0x3d   :  { %337 = vmatprep.subr.bf16.mxu1 %v460_v0 }
  0x40   :  { %338 = vmatpush3.bf16.msra.mxu1 %v363_v12 }
  0x41   :  { %339 = vmatprep.subr.bf16.mxu1 %v460_v0 }
  0x44   :  { %340 = vmatpush3.bf16.msra.mxu1 %v364_v13 }
  0xf7   :  { %v139_v15 = vpop.f32.mrf.mxu0 }
  0xf8   :  { %v140_v16 = vadd.f32 %v284_v14, %v139_v15 }
  0xf9   :  { %v323_v17 = vpop.f32.mrf.mxu0 }
  0xfa   :  { %v145_v18 = vmax.f32 %v140_v16, 0.0 }
  0xfb   :  { %v142_v19 = vpop.f32.mrf.mxu0 }
  0xfc   :  { %v146_v20 = vpack.c.bf16 %v145_v18, %v145_v18 }
  0xfd   :  { %v324_v21 = vpop.f32.mrf.mxu0 }
  0xfe   :  { %342 = vmatmul.mubr.bf16.vlgmr.msra.gmra.mxu1 %v146_v20 }
 0x1be   :  { %v252_v23 = vpop.f32.mrf.mxu1 }
 0x1bf   :  { %v253_v24 = vadd.f32 %v290_v22, %v252_v23 }
 0x1c0   :  { %v343_v25 = vpop.f32.mrf.mxu1 }
 0x1c1   :  { %258 = vmax.xlane.f32.xlu0 %v253_v24 }
 0x1c2   :  { %v255_v26 = vpop.f32.mrf.mxu1 }
 0x1c4   :  { %v344_v27 = vpop.f32.mrf.mxu1 }
 0x24a   :  { %v259_v28 = vpop.xlane.xlu0 %258 }
 0x24b   :  { %v260_v29 = vsub.f32 %v253_v24, %v259_v28 }
 0x24d   :  { %v261_v30 = vmul.f32 1.442695, %v260_v29 }
 0x24f   :  { %365 = vpow2.f32 %v261_v30 }
 0x25c   :  { %v366_v31 = vpop.eup %365 }
 0x25d   :  { %263 = vadd.xlane.f32.xlu0 %v366_v31 }
 0x2e6   :  { %v264_v32 = vpop.xlane.xlu0 %263 }
 0x2e7   :  { %367 = vrcp.f32 %v264_v32 }
 0x2f4   :  { %v368_v33 = vpop.eup %367 }
 0x2f5   :  { %v266_v34 = vmul.f32 %v368_v33, %v366_v31 }
 0x2f7   :  { %267 = vst [vmem:[#allocation8] sm:$0xff] %v266_v34 }
 0x2f8   :  { %440 = shalt.err (!%p437_p5)
}
 0x2f9   :  { %277 = dma.vmem_to_hbm [thread:$0]  %s275_s11, 128, %s516_s5, [#allocation4]  }
 0x2fa   :  { %453 = dma.done.wait [#allocation4], 128  }
 0x2fb   :  { %454 = vsyncadd [#allocation4], 4294967168 }
 0x2fc   :  { %281 = vsyncpa [#allocation3], 1 }
 0x2fd   :  { %282 = vsyncpa [#allocation6], 1 }
 0x2fe   :  { %283 = vsyncpa [#allocation4], 1 }

</bundles_post_ra>
